<compile_context>
chip_gen: v7x
topology: tpu7x:2x2x1
jax: 0.10.0
libtpu: 0.0.40
codegen_flags: <defaults>
</compile_context>

<pallas_src>
import functools

import jax
import jax.numpy as jnp
from jax import lax
from jax.experimental import pallas as pl
from jax.experimental.pallas import tpu as pltpu

_LANE = 128
_SUBLANE = 8


def _round_up(x, m):
    return ((x + m - 1) // m) * m


def _log_sigmoid(x):
    # numerically stable log(sigmoid(x)) = min(x, 0) - log1p(exp(-|x|))
    # (matches torch.nn.LogSigmoid)
    return jnp.minimum(x, 0.0) - jnp.log1p(jnp.exp(-jnp.abs(x)))


def _cbow_kernel(round_ref, target_ref, outer_ref, emb_u_ref, emb_v_ref,
                 out_ref, *, batch, block_b, n_ctx, n_outer, use_ns):
    tile = pl.program_id(0)
    n_valid = jnp.minimum(block_b, batch - tile * block_b)   # tail-tile rows
    vp = emb_u_ref.shape[0]
    inv_c = 1.0 / float(n_ctx)          # Python-constant reciprocal, no divide

    emb_u = emb_u_ref[...]              # (Vp, Dp) f32, VMEM-resident
    emb_v = emb_v_ref[...]              # (Vp, Dp) f32

    vocab_iota = lax.broadcasted_iota(jnp.int32, (block_b, vp), 1)   # (TB, Vp)

    # ---- target embedding via one-hot matmul (MXU): (TB,Vp) @ (Vp,Dp) ------
    one_hot_t = (target_ref[...] == vocab_iota).astype(jnp.float32)  # (TB, Vp)
    t_emb = jnp.dot(one_hot_t, emb_v, preferred_element_type=jnp.float32)

    # ---- scores[b, v] = t_emb[b] . emb_u[v]   (MXU, NT matmul) -------------
    scores = jnp.einsum("bd,vd->bv", t_emb, emb_u,
                        preferred_element_type=jnp.float32)          # (TB, Vp)

    # ---- per-example context / outer word multiplicities over the vocab ----
    round_idx = round_ref[...]          # (TB, C) int32
    outer_idx = outer_ref[...]          # (TB, O) int32
    counts_ctx = jnp.zeros((block_b, vp), jnp.float32)
    for ci in range(n_ctx):             # small static unroll (VPU compares)
        counts_ctx += (round_idx[:, ci:ci + 1] == vocab_iota).astype(jnp.float32)
    counts_out = jnp.zeros((block_b, vp), jnp.float32)
    for oi in range(n_outer):
        counts_out += (outer_idx[:, oi:oi + 1] == vocab_iota).astype(jnp.float32)

    # left[b] = -(target_emb[b] . mean_c emb_u[round[b,c]])
    #         = -(1/C) * sum_v counts_ctx[b,v] * scores[b,v]
    left = -inv_c * jnp.sum(counts_ctx * scores, axis=-1, keepdims=True)

    # right[b] = log( sum_o exp(scores[b, outer[b,o]]) )
    #          = log( sum_v counts_out[b,v] * exp(scores[b,v]) )
    # (un-shifted LSE on purpose, to match the PyTorch code exactly)
    exp_s = jnp.exp(scores)
    right_terms = jnp.where(counts_out > 0.0, counts_out * exp_s, 0.0)
    right = jnp.log(jnp.sum(right_terms, axis=-1, keepdims=True))

    if use_ns:
        nll = _log_sigmoid(left) + _log_sigmoid(right)                # (TB, 1)
    else:
        nll = left - right

    # Lane-dense, fully aligned store: per-example nll in lane 0, zeros
    # elsewhere, padded tail rows masked.  The wrapper sums the whole array.
    row_iota = lax.broadcasted_iota(jnp.int32, out_ref.shape, 0)
    lane_iota = lax.broadcasted_iota(jnp.int32, out_ref.shape, 1)
    keep = (row_iota < n_valid) & (lane_iota == 0)
    out_ref[...] = jnp.where(keep, nll, 0.0)


def pad_embedding_table(table):
    """Zero-pad a (V, D) table to lane/sublane-aligned (Vp, Dp) f32.  Do ONCE."""
    v, d = table.shape
    vp = _round_up(v, _SUBLANE)
    dp = _round_up(d, _LANE)
    return jnp.zeros((vp, dp), jnp.float32).at[:v, :d].set(
        table.astype(jnp.float32))


def cbow_loss_pallas(emb_v_pad, emb_u_pad, round_words, target_words,
                     outer_words, *, use_ns=True, block_b=256):
    """round (B,C), target (B,), outer (B,O) int indices -> scalar loss."""
    vp, dp = emb_u_pad.shape
    b, c = round_words.shape
    o = outer_words.shape[1]

    tb = _round_up(min(block_b, _round_up(b, _SUBLANE)), _SUBLANE)
    num_tiles = pl.cdiv(b, tb)
    b_pad = num_tiles * tb

    def pad_rows(x):                     # pad batch rows with index 0 (masked)
        return jnp.zeros((b_pad,) + x.shape[1:], jnp.int32).at[:b].set(
            x.astype(jnp.int32))

    round_p = pad_rows(round_words)
    target_p = pad_rows(target_words.reshape(b, 1))
    outer_p = pad_rows(outer_words)

    kernel = functools.partial(
        _cbow_kernel, batch=b, block_b=tb, n_ctx=c, n_outer=o, use_ns=use_ns)

    grid_spec = pltpu.PrefetchScalarGridSpec(
        num_scalar_prefetch=0,
        grid=(num_tiles,),
        in_specs=[
            pl.BlockSpec((tb, c), lambda i: (i, 0)),       # context indices
            pl.BlockSpec((tb, 1), lambda i: (i, 0)),       # target indices
            pl.BlockSpec((tb, o), lambda i: (i, 0)),       # outer indices
            # Tables: whole-array VMEM blocks with a constant index_map ->
            # fetched once, kept resident across all grid steps.
            pl.BlockSpec((vp, dp), lambda i: (0, 0)),
            pl.BlockSpec((vp, dp), lambda i: (0, 0)),
        ],
        out_specs=pl.BlockSpec((tb, _LANE), lambda i: (i, 0)),
    )

    # Explicit VMEM budget: tables (default double-buffered) + small index /
    # output blocks + headroom, capped at v7x's 64 MiB per TensorCore.
    table_bytes = 2 * vp * dp * 4
    vmem_limit = int(min(64 * 1024 * 1024,
                         max(16 * 1024 * 1024, 4 * table_bytes + (4 << 20))))

    partials = pl.pallas_call(
        kernel,
        out_shape=jax.ShapeDtypeStruct((b_pad, _LANE), jnp.float32),
        grid_spec=grid_spec,
        compiler_params=pltpu.CompilerParams(
            dimension_semantics=("parallel",),
            vmem_limit_bytes=vmem_limit),
    )(round_p, target_p, outer_p, emb_u_pad, emb_v_pad)

    # loss = -mean(nll); padded rows / lanes hold exact zeros.
    return -jnp.sum(partials) * (1.0 / b)


def cbow_forward(emb_v_pad, emb_u_pad, round_words, target_words, outer_words,
                 *, use_ns=True, block_b=256):
    """Full CBow.forward: index plumbing in JAX, gathers + math in Pallas."""
    batch_size = round_words.shape[0]
    if outer_words.ndim == 1 or outer_words.shape[0] != batch_size:
        outer_words = jnp.broadcast_to(
            outer_words.reshape(1, -1), (batch_size, outer_words.shape[-1]))
    # target_words has one target per batch element (T == 1), matching the
    # .squeeze(2) semantics of the PyTorch code.
    target_flat = target_words.reshape(batch_size)
    return cbow_loss_pallas(emb_v_pad, emb_u_pad, round_words, target_flat,
                            outer_words, use_ns=use_ns, block_b=block_b)


def cbow_reference(emb_v, emb_u, round_words, target_words, outer_words,
                   *, use_ns=True):
    """Pure-JAX reference mirroring the PyTorch forward, for verification."""
    batch_size = round_words.shape[0]
    if outer_words.ndim == 1 or outer_words.shape[0] != batch_size:
        outer_words = jnp.broadcast_to(
            outer_words.reshape(1, -1), (batch_size, outer_words.shape[-1]))
    round_emb = jnp.take(emb_u, round_words, axis=0)
    target_emb = jnp.take(emb_v, target_words, axis=0)
    outer_emb = jnp.take(emb_u, outer_words, axis=0)
    h = jnp.mean(round_emb, axis=1)[:, None, :]                          # (B,1,D)
    left = -jnp.einsum("btd,bsd->bts", target_emb, h)[:, :, 0]           # (B,1)
    right = jnp.einsum("bod,btd->bot", outer_emb, target_emb)[:, :, 0]   # (B,O)
    right = jnp.log(jnp.sum(jnp.exp(right), axis=1, keepdims=True))      # (B,1)
    if use_ns:
        nll = _log_sigmoid(left) + _log_sigmoid(right)
    else:
        nll = left - right
    return -jnp.mean(nll)


if __name__ == "__main__":
    # Model hyperparameters (synthetic, small).
    vocab_size = 50
    projection_dim = 32
    use_ns = True        # corresponds to CBow(..., ns=<not None>)

    # Deterministic parameter init.  NOTE: the original __init__ zero-inits
    # embedding_u; a deterministic uniform init is used instead so the forward
    # pass is numerically non-degenerate (synthetic weights, not a checkpoint).
    k_v, k_u, k_r, k_t, k_o = jax.random.split(jax.random.PRNGKey(0), 5)
    emb_v = jax.random.uniform(
        k_v, (vocab_size, projection_dim), jnp.float32, minval=-1.0, maxval=1.0)
    emb_u = jax.random.uniform(
        k_u, (vocab_size, projection_dim), jnp.float32, minval=-1.0, maxval=1.0)

    # Pad / align the embedding tables ONCE (hoisted out of the forward).
    emb_v_pad = pad_embedding_table(emb_v)
    emb_u_pad = pad_embedding_table(emb_u)

    # Example inputs: batch=10, 4 context words, 1 target word, 6 outer words.
    # block_b=8 -> 2 batch tiles (even grid for v7x megacore), last tile only
    # partially filled (exercises the iota < n_valid tail mask).
    B, C, O = 10, 4, 6
    round_words = jax.random.randint(k_r, (B, C), 0, vocab_size)
    target_words = jax.random.randint(k_t, (B, 1), 0, vocab_size)
    outer_words = jax.random.randint(k_o, (O,), 0, vocab_size)  # 1-D -> expanded

    loss_fn = jax.jit(functools.partial(cbow_forward, use_ns=use_ns, block_b=8))
    loss = jax.block_until_ready(
        loss_fn(emb_v_pad, emb_u_pad, round_words, target_words, outer_words))

    ref = cbow_reference(emb_v, emb_u, round_words, target_words, outer_words,
                         use_ns=use_ns)
    assert jnp.allclose(loss, ref, rtol=1e-4, atol=1e-4), (loss, ref)

    print("KERNEL_OK")
</pallas_src>

<mosaic_0001>
module attributes {stable_mosaic.version = 11 : i64} {
  func.func @_cbow_kernel(%arg0: i32, %arg1: memref<8x4xi32, #tpu.memory_space<vmem>>, %arg2: memref<8x1xi32, #tpu.memory_space<vmem>>, %arg3: memref<8x6xi32, #tpu.memory_space<vmem>>, %arg4: memref<56x128xf32, #tpu.memory_space<vmem>>, %arg5: memref<56x128xf32, #tpu.memory_space<vmem>>, %arg6: memref<8x128xf32, #tpu.memory_space<vmem>>) attributes {dimension_semantics = [#tpu.dimension_semantics<parallel>], iteration_bounds = array<i64: 2>, scalar_prefetch = 0 : i64, scratch_operands = 0 : i64, tpu.core_type = #tpu.core_type<tc>, window_params = [{transform_indices = @transform_0, window_bounds = array<i64: 8, 4>}, {transform_indices = @transform_1, window_bounds = array<i64: 8, 1>}, {transform_indices = @transform_2, window_bounds = array<i64: 8, 6>}, {pipeline_mode = #tpu.pipeline_mode<synchronous>, transform_indices = @transform_3, window_bounds = array<i64: 56, 128>}, {pipeline_mode = #tpu.pipeline_mode<synchronous>, transform_indices = @transform_4, window_bounds = array<i64: 56, 128>}, {transform_indices = @transform_5, window_bounds = array<i64: 8, 128>}]} {
    %c8_i32 = arith.constant 8 : i32
    %0 = arith.muli %arg0, %c8_i32 : i32
    %c10_i32 = arith.constant 10 : i32
    %1 = arith.subi %c10_i32, %0 : i32
    %c8_i32_0 = arith.constant 8 : i32
    %2 = arith.minsi %c8_i32_0, %1 : i32
    %c0 = arith.constant 0 : index
    %c0_1 = arith.constant 0 : index
    %3 = vector.load %arg4[%c0, %c0_1] : memref<56x128xf32, #tpu.memory_space<vmem>>, vector<56x128xf32>
    %c0_2 = arith.constant 0 : index
    %c0_3 = arith.constant 0 : index
    %4 = vector.load %arg5[%c0_2, %c0_3] : memref<56x128xf32, #tpu.memory_space<vmem>>, vector<56x128xf32>
    %5 = tpu.iota {dimensions = array<i32: 1>} : vector<8x56xi32>
    %c0_4 = arith.constant 0 : index
    %c0_5 = arith.constant 0 : index
    %6 = vector.load %arg2[%c0_4, %c0_5] : memref<8x1xi32, #tpu.memory_space<vmem>>, vector<8x1xi32>
    %7 = vector.broadcast %6 : vector<8x1xi32> to vector<8x56xi32>
    %8 = arith.cmpi eq, %7, %5 : vector<8x56xi32>
    %9 = arith.extui %8 : vector<8x56xi1> to vector<8x56xi32>
    %10 = arith.sitofp %9 : vector<8x56xi32> to vector<8x56xf32>
    %cst = arith.constant dense<0.000000e+00> : vector<8x128xf32>
    %11 = tpu.matmul %10, %4, %cst {dimension_numbers = #tpu.dot_dimension_numbers<[1], [0], [0], [1], [0, 0, 1, 1], [], []>} : vector<8x56xf32>, vector<56x128xf32>, vector<8x128xf32> -> vector<8x128xf32>
    "tpu.trace_start"() <{level = 10 : i32, message = "bd,vd->bv"}> : () -> ()
    %cst_6 = arith.constant dense<0.000000e+00> : vector<8x56xf32>
    %12 = tpu.matmul %11, %3, %cst_6 {dimension_numbers = #tpu.dot_dimension_numbers<[1], [1], [0], [0], [0, 0, 1, 0], [], []>} : vector<8x128xf32>, vector<56x128xf32>, vector<8x56xf32> -> vector<8x56xf32>
    "tpu.trace_stop"() : () -> ()
    %c0_7 = arith.constant 0 : index
    %c0_8 = arith.constant 0 : index
    %13 = vector.load %arg1[%c0_7, %c0_8] : memref<8x4xi32, #tpu.memory_space<vmem>>, vector<8x4xi32>
    %c0_9 = arith.constant 0 : index
    %c0_10 = arith.constant 0 : index
    %14 = vector.load %arg3[%c0_9, %c0_10] : memref<8x6xi32, #tpu.memory_space<vmem>>, vector<8x6xi32>
    %cst_11 = arith.constant 0.000000e+00 : f32
    %15 = vector.broadcast %cst_11 : f32 to vector<8x56xf32>
    %16 = vector.extract_strided_slice %13 {offsets = [0, 0], sizes = [8, 1], strides = [1, 1]} : vector<8x4xi32> to vector<8x1xi32>
    %17 = vector.broadcast %16 : vector<8x1xi32> to vector<8x56xi32>
    %18 = arith.cmpi eq, %17, %5 : vector<8x56xi32>
    %19 = arith.extui %18 : vector<8x56xi1> to vector<8x56xi32>
    %20 = arith.sitofp %19 : vector<8x56xi32> to vector<8x56xf32>
    %21 = arith.addf %15, %20 : vector<8x56xf32>
    %22 = vector.extract_strided_slice %13 {offsets = [0, 1], sizes = [8, 1], strides = [1, 1]} : vector<8x4xi32> to vector<8x1xi32>
    %23 = vector.broadcast %22 : vector<8x1xi32> to vector<8x56xi32>
    %24 = arith.cmpi eq, %23, %5 : vector<8x56xi32>
    %25 = arith.extui %24 : vector<8x56xi1> to vector<8x56xi32>
    %26 = arith.sitofp %25 : vector<8x56xi32> to vector<8x56xf32>
    %27 = arith.addf %21, %26 : vector<8x56xf32>
    %28 = vector.extract_strided_slice %13 {offsets = [0, 2], sizes = [8, 1], strides = [1, 1]} : vector<8x4xi32> to vector<8x1xi32>
    %29 = vector.broadcast %28 : vector<8x1xi32> to vector<8x56xi32>
    %30 = arith.cmpi eq, %29, %5 : vector<8x56xi32>
    %31 = arith.extui %30 : vector<8x56xi1> to vector<8x56xi32>
    %32 = arith.sitofp %31 : vector<8x56xi32> to vector<8x56xf32>
    %33 = arith.addf %27, %32 : vector<8x56xf32>
    %34 = vector.extract_strided_slice %13 {offsets = [0, 3], sizes = [8, 1], strides = [1, 1]} : vector<8x4xi32> to vector<8x1xi32>
    %35 = vector.broadcast %34 : vector<8x1xi32> to vector<8x56xi32>
    %36 = arith.cmpi eq, %35, %5 : vector<8x56xi32>
    %37 = arith.extui %36 : vector<8x56xi1> to vector<8x56xi32>
    %38 = arith.sitofp %37 : vector<8x56xi32> to vector<8x56xf32>
    %39 = arith.addf %33, %38 : vector<8x56xf32>
    %cst_12 = arith.constant 0.000000e+00 : f32
    %40 = vector.broadcast %cst_12 : f32 to vector<8x56xf32>
    %41 = vector.extract_strided_slice %14 {offsets = [0, 0], sizes = [8, 1], strides = [1, 1]} : vector<8x6xi32> to vector<8x1xi32>
    %42 = vector.broadcast %41 : vector<8x1xi32> to vector<8x56xi32>
    %43 = arith.cmpi eq, %42, %5 : vector<8x56xi32>
    %44 = arith.extui %43 : vector<8x56xi1> to vector<8x56xi32>
    %45 = arith.sitofp %44 : vector<8x56xi32> to vector<8x56xf32>
    %46 = arith.addf %40, %45 : vector<8x56xf32>
    %47 = vector.extract_strided_slice %14 {offsets = [0, 1], sizes = [8, 1], strides = [1, 1]} : vector<8x6xi32> to vector<8x1xi32>
    %48 = vector.broadcast %47 : vector<8x1xi32> to vector<8x56xi32>
    %49 = arith.cmpi eq, %48, %5 : vector<8x56xi32>
    %50 = arith.extui %49 : vector<8x56xi1> to vector<8x56xi32>
    %51 = arith.sitofp %50 : vector<8x56xi32> to vector<8x56xf32>
    %52 = arith.addf %46, %51 : vector<8x56xf32>
    %53 = vector.extract_strided_slice %14 {offsets = [0, 2], sizes = [8, 1], strides = [1, 1]} : vector<8x6xi32> to vector<8x1xi32>
    %54 = vector.broadcast %53 : vector<8x1xi32> to vector<8x56xi32>
    %55 = arith.cmpi eq, %54, %5 : vector<8x56xi32>
    %56 = arith.extui %55 : vector<8x56xi1> to vector<8x56xi32>
    %57 = arith.sitofp %56 : vector<8x56xi32> to vector<8x56xf32>
    %58 = arith.addf %52, %57 : vector<8x56xf32>
    %59 = vector.extract_strided_slice %14 {offsets = [0, 3], sizes = [8, 1], strides = [1, 1]} : vector<8x6xi32> to vector<8x1xi32>
    %60 = vector.broadcast %59 : vector<8x1xi32> to vector<8x56xi32>
    %61 = arith.cmpi eq, %60, %5 : vector<8x56xi32>
    %62 = arith.extui %61 : vector<8x56xi1> to vector<8x56xi32>
    %63 = arith.sitofp %62 : vector<8x56xi32> to vector<8x56xf32>
    %64 = arith.addf %58, %63 : vector<8x56xf32>
    %65 = vector.extract_strided_slice %14 {offsets = [0, 4], sizes = [8, 1], strides = [1, 1]} : vector<8x6xi32> to vector<8x1xi32>
    %66 = vector.broadcast %65 : vector<8x1xi32> to vector<8x56xi32>
    %67 = arith.cmpi eq, %66, %5 : vector<8x56xi32>
    %68 = arith.extui %67 : vector<8x56xi1> to vector<8x56xi32>
    %69 = arith.sitofp %68 : vector<8x56xi32> to vector<8x56xf32>
    %70 = arith.addf %64, %69 : vector<8x56xf32>
    %71 = vector.extract_strided_slice %14 {offsets = [0, 5], sizes = [8, 1], strides = [1, 1]} : vector<8x6xi32> to vector<8x1xi32>
    %72 = vector.broadcast %71 : vector<8x1xi32> to vector<8x56xi32>
    %73 = arith.cmpi eq, %72, %5 : vector<8x56xi32>
    %74 = arith.extui %73 : vector<8x56xi1> to vector<8x56xi32>
    %75 = arith.sitofp %74 : vector<8x56xi32> to vector<8x56xf32>
    %76 = arith.addf %70, %75 : vector<8x56xf32>
    %77 = arith.mulf %39, %12 : vector<8x56xf32>
    %cst_13 = arith.constant dense<0.000000e+00> : vector<8xf32>
    %78 = vector.multi_reduction <add>, %77, %cst_13 [1] : vector<8x56xf32> to vector<8xf32>
    %79 = vector.shape_cast %78 : vector<8xf32> to vector<8x1xf32>
    %cst_14 = arith.constant -2.500000e-01 : f32
    %80 = vector.broadcast %cst_14 : f32 to vector<8x1xf32>
    %81 = arith.mulf %80, %79 : vector<8x1xf32>
    %82 = math.exp %12 : vector<8x56xf32>
    %cst_15 = arith.constant 0.000000e+00 : f32
    %83 = vector.broadcast %cst_15 : f32 to vector<8x56xf32>
    %84 = arith.cmpf ogt, %76, %83 : vector<8x56xf32>
    %85 = arith.mulf %76, %82 : vector<8x56xf32>
    %cst_16 = arith.constant 0.000000e+00 : f32
    %86 = vector.broadcast %cst_16 : f32 to vector<8x56xf32>
    %87 = arith.select %84, %85, %86 : vector<8x56xi1>, vector<8x56xf32>
    %cst_17 = arith.constant dense<0.000000e+00> : vector<8xf32>
    %88 = vector.multi_reduction <add>, %87, %cst_17 [1] : vector<8x56xf32> to vector<8xf32>
    %89 = vector.shape_cast %88 : vector<8xf32> to vector<8x1xf32>
    %90 = math.log %89 : vector<8x1xf32>
    %cst_18 = arith.constant 0.000000e+00 : f32
    %91 = vector.broadcast %cst_18 : f32 to vector<8x1xf32>
    %92 = arith.minimumf %81, %91 : vector<8x1xf32>
    %93 = math.absf %81 : vector<8x1xf32>
    %cst_19 = arith.constant 0.000000e+00 : f32
    %94 = vector.broadcast %cst_19 : f32 to vector<8x1xf32>
    %95 = arith.subf %94, %93 : vector<8x1xf32>
    %96 = math.exp %95 : vector<8x1xf32>
    %97 = math.log1p %96 : vector<8x1xf32>
    %98 = arith.subf %92, %97 : vector<8x1xf32>
    %cst_20 = arith.constant 0.000000e+00 : f32
    %99 = vector.broadcast %cst_20 : f32 to vector<8x1xf32>
    %100 = arith.minimumf %90, %99 : vector<8x1xf32>
    %101 = math.absf %90 : vector<8x1xf32>
    %cst_21 = arith.constant 0.000000e+00 : f32
    %102 = vector.broadcast %cst_21 : f32 to vector<8x1xf32>
    %103 = arith.subf %102, %101 : vector<8x1xf32>
    %104 = math.exp %103 : vector<8x1xf32>
    %105 = math.log1p %104 : vector<8x1xf32>
    %106 = arith.subf %100, %105 : vector<8x1xf32>
    %107 = arith.addf %98, %106 : vector<8x1xf32>
    %108 = tpu.iota {dimensions = array<i32: 0>} : vector<8x128xi32>
    %109 = tpu.iota {dimensions = array<i32: 1>} : vector<8x128xi32>
    %110 = vector.broadcast %2 : i32 to vector<8x128xi32>
    %111 = arith.cmpi slt, %108, %110 : vector<8x128xi32>
    %c0_i32 = arith.constant 0 : i32
    %112 = vector.broadcast %c0_i32 : i32 to vector<8x128xi32>
    %113 = arith.cmpi eq, %109, %112 : vector<8x128xi32>
    %114 = arith.andi %111, %113 : vector<8x128xi1>
    %cst_22 = arith.constant 0.000000e+00 : f32
    %115 = vector.shape_cast %107 : vector<8x1xf32> to vector<8x1xf32>
    %116 = vector.broadcast %115 : vector<8x1xf32> to vector<8x128xf32>
    %117 = vector.broadcast %cst_22 : f32 to vector<8x128xf32>
    %118 = arith.select %114, %116, %117 : vector<8x128xi1>, vector<8x128xf32>
    %c0_23 = arith.constant 0 : index
    %c0_24 = arith.constant 0 : index
    %119 = vector.load %arg6[%c0_23, %c0_24] : memref<8x128xf32, #tpu.memory_space<vmem>>, vector<8x128xf32>
    tpu.vector_store %arg6[%c0_23, %c0_24], %118 {strides = array<i32>} : memref<8x128xf32, #tpu.memory_space<vmem>>, vector<8x128xf32>,
    return
  }
  func.func @transform_0(%arg0: i32) -> (i32, i32) {
    %c0_i32 = arith.constant 0 : i32
    %c0_i32_0 = arith.constant 0 : i32
    return %arg0, %c0_i32 : i32, i32
  }
  func.func @transform_1(%arg0: i32) -> (i32, i32) {
    %c0_i32 = arith.constant 0 : i32
    %c0_i32_0 = arith.constant 0 : i32
    return %arg0, %c0_i32 : i32, i32
  }
  func.func @transform_2(%arg0: i32) -> (i32, i32) {
    %c0_i32 = arith.constant 0 : i32
    %c0_i32_0 = arith.constant 0 : i32
    return %arg0, %c0_i32 : i32, i32
  }
  func.func @transform_3(%arg0: i32) -> (i32, i32) {
    %c0_i32 = arith.constant 0 : i32
    %c0_i32_0 = arith.constant 0 : i32
    %c0_i32_1 = arith.constant 0 : i32
    return %c0_i32, %c0_i32_0 : i32, i32
  }
  func.func @transform_4(%arg0: i32) -> (i32, i32) {
    %c0_i32 = arith.constant 0 : i32
    %c0_i32_0 = arith.constant 0 : i32
    %c0_i32_1 = arith.constant 0 : i32
    return %c0_i32, %c0_i32_0 : i32, i32
  }
  func.func @transform_5(%arg0: i32) -> (i32, i32) {
    %c0_i32 = arith.constant 0 : i32
    %c0_i32_0 = arith.constant 0 : i32
    return %arg0, %c0_i32 : i32, i32
  }
}

</mosaic_0001>

<bundles_post_ra>
// kernel: cbow_forward.1
= control target key start
LH: loop header
LB: loop body
LE: loop exit
PB: predicated region body
PF: predicated region fallthrough
CT: control target
= control target key end

     0   :  { %s807_s18 = smov 0   ;;  %s917_s0 = inlined_call_operand.vmem [shape: s32[16,4], index: 0, kind: input, shape index: {}]   ;;  %s918_s1 = inlined_call_operand.vmem [shape: s32[16,1], index: 1, kind: input, shape index: {}]   ;;  %s919_s2 = inlined_call_operand.vmem [shape: s32[16,6], index: 2, kind: input, shape index: {}]   ;;  %s920_s3 = inlined_call_operand.vmem [shape: f32[56,128], index: 3, kind: input, shape index: {}]   ;;  %s921_s4 = inlined_call_operand.vmem [shape: f32[56,128], index: 4, kind: input, shape index: {}]   ;;  %s922_s5 = inlined_call_operand.vmem [shape: f32[16,128], index: 5, kind: output, shape index: {}]  }
   0x1 LB: > { %s813_s19 = sadd.s32 4294967295, %s766_s18   ;;  %p632_p0 = scmp.ge.s32.totalorder %s766_s18, 1  ;;  %s766_s18 = sphi %s807_s18, %s15_s18  }
   0x2   : > { %p204_p1 = scmp.lt.s32.totalorder %s766_s18, 3 }
   0x4   : > { %p205_p2 = pnand %p632_p0, %p204_p1 }
   0x5   : > { %p238_p3 = scmp.lt.s32.totalorder (!%p205_p2), %s813_s19, 1  ;;  %v265_v0 = vld [vmem:[%s921_s4] sm:$0xff] (!%p205_p2)  ;;  %v768_v1 = vmov (!%p205_p2), 1   ;;  %v769_v2 = vmov (!%p205_p2), 0   ;;  %v266_v3 = vld [vmem:[%s921_s4 + $0x8] sm:$0xff] (!%p205_p2)  ;;  %v267_v4 = vld [vmem:[%s921_s4 + $0x10] sm:$0xff] (!%p205_p2)  ;;  %v272_v30 = vlaneseq (!%p205_p2) }
   0x6   : > { %208 = sbr.rel (%p205_p2) target bundleno = 784 (0x310), region = 40  ;;  %738 = vset.pattern.permute.xlu1 (!%p205_p2), %v768_v1  ;;  %737 = vset.pattern.permute.xlu0 (!%p205_p2), %v769_v2  ;;  %v268_v5 = vld [vmem:[%s921_s4 + $0x18] sm:$0xff] (!%p205_p2)  ;;  %v770_v6 = vmov (!%p205_p2), 0.0|0.0   ;;  %v703_v7 = vpack.c.bf16 (!%p205_p2), %v266_v3, %v265_v0  ;;  %v269_v9 = vld [vmem:[%s921_s4 + $0x20] sm:$0xff] (!%p205_p2)  ;;  %v270_v10 = vld [vmem:[%s921_s4 + $0x28] sm:$0xff] (!%p205_p2)  ;;  %vm771_vm0 = vmmov (!%p205_p2), 0  }
   0x7   : > { %702 = vmatprep.subr.bf16.mxu0 (!%p205_p2), %v770_v6  ;;  %711 = vmatprep.subr.bf16.mxu1 (!%p205_p2), %v770_v6  ;;  %v706_v8 = vpack.c.bf16 (!%p205_p2), %v268_v5, %v267_v4  ;;  %v709_v13 = vpack.c.bf16 (!%p205_p2), %v270_v10, %v269_v9  ;;  %v772_v14 = vmov (!%p205_p2), 0.0   ;;  %v773_v15 = vmov (!%p205_p2), 2   ;;  %v271_v16 = vld [vmem:[%s921_s4 + $0x30] sm:$0xff] (!%p205_p2)  ;;  %v258_v20 = vld [vmem:[%s920_s3] sm:$0xff] (!%p205_p2)  ;;  %v259_v21 = vld [vmem:[%s920_s3 + $0x8] sm:$0xff] (!%p205_p2)  ;;  %s637_s12 = sshll.u32 (!%p205_p2), %s813_s19, 3 }
   0x8   : > { %704 = vmatpush3.bf16.msra.mxu0 (!%p205_p2), %v703_v7  ;;  %682 = vmatprep.mubr.msk.f32.mxu0 (!%p205_p2), %vm771_vm0, %v772_v14  ;;  %v774_v17 = vmov (!%p205_p2), 3   ;;  %v775_v18 = vmov (!%p205_p2), 4   ;;  %v776_v19 = vmov (!%p205_p2), 5   ;;  %v712_v22 = vpack.c.bf16 (!%p205_p2), %v259_v21, %v258_v20  ;;  %v260_v23 = vld [vmem:[%s920_s3 + $0x10] sm:$0xff] (!%p205_p2)  ;;  %v261_v24 = vld [vmem:[%s920_s3 + $0x18] sm:$0xff] (!%p205_p2)  ;;  %v262_v26 = vld [vmem:[%s920_s3 + $0x20] sm:$0xff] (!%p205_p2) }
   0x9   : > { %705 = vmatprep.subr.bf16.mxu0 (!%p205_p2), %v770_v6  ;;  %699 = vmatprep.mubr.msk.f32.mxu1 (!%p205_p2), %vm771_vm0, %v772_v14  ;;  %v715_v25 = vpack.c.bf16 (!%p205_p2), %v261_v24, %v260_v23  ;;  %v263_v27 = vld [vmem:[%s920_s3 + $0x28] sm:$0xff] (!%p205_p2)  ;;  %v264_v29 = vld [vmem:[%s920_s3 + $0x30] sm:$0xff] (!%p205_p2)  ;;  %v876_v31 = vand.u32 (!%p205_p2), 127, %v272_v30  ;;  %vm281_vm1 = vcmask (!%p205_p2), 457728   ;;  %s255_s13 = ssub.s32 (!%p205_p2), 10, %s637_s12 }
   0xa   : > { %713 = vmatpush3.bf16.xpose.msra.mxu1 (!%p205_p2), %v712_v22  ;;  %v718_v28 = vpack.c.bf16 (!%p205_p2), %v263_v27, %v262_v26  ;;  %p256_p4 = scmp.lt.s32.totalorder (!%p205_p2), %s255_s13, 8 }
   0xb   : > { %714 = vmatprep.subr.bf16.mxu1 (!%p205_p2), %v770_v6  ;;  %vm547_vm15 = vcmp.eq.s32.totalorder (!%p205_p2), %v876_v31, 0 }
   0xc   : > { %707 = vmatpush3.bf16.msra.mxu0 (!%p205_p2), %v706_v8 }
   0xd   : > { %s239_s28 = scalar_select %p238_p3, %s813_s19, 1  ;;  %708 = vmatprep.subr.bf16.mxu0 %v770_v6 }
   0xe   : > { %s924_s13 = smov (!%p256_p4, %s255_s13), 8 }
   0xf   : > { %s831_s29 = sshll.u32 %s239_s28, 3 }
  0x10   : > { %s249_s7 = scalar_lea.vmem %s919_s2, %s831_s29  ;;  %s245_s10 = scalar_lea.vmem %s918_s1, %s831_s29  ;;  %710 = vmatpush3.bf16.msra.mxu0 %v709_v13 }
  0x11   : > { %v426_v11 = vld [vmem:[%s249_s7] sm:$0xff]  ;;  %680 = vmatprep.subr.mxu0 %v772_v14  ;;  %s241_s11 = scalar_lea.vmem %s917_s0, %s831_s29  ;;  %s253_s15 = scalar_lea.vmem %s922_s5, %s831_s29 }
  0x12   : > { %v274_v12 = vld [vmem:[%s245_s10] sm:$0xff]  ;;  %463 = vperm.xlu1 %738, %v426_v11   ;;  %716 = vmatpush3.bf16.xpose.msra.mxu1 %v715_v25 }
  0x13   : > { %276 = vperm.xlu0 %737, %v274_v12   ;;  %717 = vmatprep.subr.bf16.mxu1 %v770_v6  ;;  %v425_v34 = vld [vmem:[%s241_s11] sm:$0xff] }
  0x14   : > { %681 = vmatpush3.msra.mxu0 %v271_v16 }
  0x16   : > { %739 = vset.pattern.permute.xlu1 %v773_v15 }
  0x17   : > { %456 = vperm.xlu0 %737, %v426_v11   ;;  %470 = vperm.xlu1 %739, %v426_v11  }
  0x1a   : > { %719 = vmatpush3.bf16.xpose.msra.mxu1 %v718_v28 }
  0x1b   : > { %740 = vset.pattern.permute.xlu0 %v774_v17  ;;  %741 = vset.pattern.permute.xlu1 %v775_v18 }
  0x1c   : > { %477 = vperm.xlu0 %740, %v426_v11   ;;  %484 = vperm.xlu1 %741, %v426_v11  }
  0x1d   : > { %697 = vmatprep.subr.mxu1 %v772_v14 }
  0x20   : > { %743 = vset.pattern.permute.xlu0 %v769_v2  ;;  %742 = vset.pattern.permute.xlu1 %v776_v19 }
  0x21   : > { %491 = vperm.xlu1 %742, %v426_v11   ;;  %428 = vperm.xlu0 %743, %v425_v34  }
  0x22   : > { %698 = vmatpush3.xpose.msra.mxu1 %v264_v29 }
  0x25   : > { %744 = vset.pattern.permute.xlu1 %v768_v1  ;;  %746 = vset.pattern.permute.xlu0 %v774_v17 }
  0x26   : > { %435 = vperm.xlu1 %744, %v425_v34   ;;  %449 = vperm.xlu0 %746, %v425_v34  }
  0x2a   : > { %745 = vset.pattern.permute.xlu1 %v773_v15  ;;  %747 = vset.pattern.permute.xlu0 %v776_v19 }
  0x2b   : > { %442 = vperm.xlu1 %745, %v425_v34   ;;  %v544_v34 = vshrl.u32 %v272_v30, 7 }
  0x91   : > { %v464_v37 = vpop.permute.xlu1 %463 }
  0x92   : > { %v277_v32 = vpop.permute.xlu0 %276  ;;  %vm465_vm6 = vcmp.eq.s32.totalorder %v464_v37, %v876_v31  ;;  %v545_v37 = vstv %s924_s13 }
  0x93   : > { %vm278_vm2 = vcmp.eq.s32.totalorder %v277_v32, %v876_v31  ;;  %v645_v52 = vsel %vm465_vm6, 1.0, %v772_v14  ;;  %vm546_vm0 = vcmp.lt.s32.totalorder %v544_v34, %v545_v37 }
  0x94   : > { %v638_v33 = vsel %vm278_vm2, 1.0, %v772_v14  ;;  %vm548_vm2 = vmand %vm546_vm0, %vm547_vm15 }
  0x95   : > { %683 = vmatmul.mubr.msk.f32.vlgmr.msra.gmra.mrb[0].mxu0 %vm281_vm1, %v638_v33 }
  0x96   : > { %v471_v38 = vpop.permute.xlu1 %470  ;;  %v457_v40 = vpop.permute.xlu0 %456 }
  0x97   : > { %vm458_vm7 = vcmp.eq.s32.totalorder %v457_v40, %v876_v31  ;;  %vm472_vm9 = vcmp.eq.s32.totalorder %v471_v38, %v876_v31 }
  0x98   : > { %v644_v53 = vsel %vm458_vm7, 1.0, %v772_v14  ;;  %v646_v57 = vsel %vm472_vm9, 1.0, %v772_v14 }
  0x99   : > { %v468_v55 = vadd.f32 %v645_v52, %v644_v53 }
  0x9b   : > { %v485_v39 = vpop.permute.xlu1 %484  ;;  %v478_v42 = vpop.permute.xlu0 %477  ;;  %v475_v59 = vadd.f32 %v646_v57, %v468_v55 }
  0x9c   : > { %vm479_vm10 = vcmp.eq.s32.totalorder %v478_v42, %v876_v31  ;;  %vm486_vm11 = vcmp.eq.s32.totalorder %v485_v39, %v876_v31 }
  0x9d   : > { %v647_v63 = vsel %vm479_vm10, 1.0, %v772_v14  ;;  %v648_v2 = vsel %vm486_vm11, 1.0, %v772_v14 }
  0x9e   : > { %v482_v1 = vadd.f32 %v647_v63, %v475_v59 }
  0xa0   : > { %v492_v41 = vpop.permute.xlu1 %491  ;;  %v429_v44 = vpop.permute.xlu0 %428  ;;  %v489_v4 = vadd.f32 %v648_v2, %v482_v1 }
  0xa1   : > { %vm430_vm4 = vcmp.eq.s32.totalorder %v429_v44, %v876_v31  ;;  %vm493_vm12 = vcmp.eq.s32.totalorder %v492_v41, %v876_v31 }
  0xa2   : > { %v640_v47 = vsel %vm430_vm4, 1.0, %v772_v14  ;;  %v649_v3 = vsel %vm493_vm12, 1.0, %v772_v14 }
  0xa3   : > { %v496_v5 = vadd.f32 %v649_v3, %v489_v4 }
  0xa5   : > { %v436_v43 = vpop.permute.xlu1 %435  ;;  %v450_v48 = vpop.permute.xlu0 %449  ;;  %vm504_vm13 = vcmp.gt.f32.partialorder %v496_v5, 0.0 }
  0xa6   : > { %vm437_vm3 = vcmp.eq.s32.totalorder %v436_v43, %v876_v31  ;;  %vm451_vm8 = vcmp.eq.s32.totalorder %v450_v48, %v876_v31 }
  0xa7   : > { %v641_v46 = vsel %vm437_vm3, 1.0, %v772_v14  ;;  %v643_v54 = vsel %vm451_vm8, 1.0, %v772_v14 }
  0xa8   : > { %v440_v49 = vadd.f32 %v641_v46, %v640_v47 }
  0xaa   : > { %v443_v45 = vpop.permute.xlu1 %442 }
  0xab   : > { %vm444_vm5 = vcmp.eq.s32.totalorder %v443_v45, %v876_v31 }
  0xac   : > { %v642_v50 = vsel %vm444_vm5, 1.0, %v772_v14 }
  0xad   : > { %v447_v51 = vadd.f32 %v642_v50, %v440_v49 }
  0xaf   : > { %v454_v56 = vadd.f32 %v643_v54, %v447_v51 }
 0x168   : > { %v351_v35 = vpop.f32.mrb[0].mxu0 }
 0x169   : > { %v684_v36 = vpop.f32.mrb[1].mxu0  ;;  %700 = vmatmul.mubr.f32.vlgmr.msra.gmra.mrb[0].mxu1 %v351_v35 }
 0x23c   : > { %v421_v58 = vpop.f32.mrb[0].mxu1 }
 0x23d   : > { %v497_v60 = vmul.f32 %v454_v56, %v421_v58  ;;  %v502_v61 = vmul.f32 1.442695, %v421_v58  ;;  %v701_v62 = vpop.f32.mrb[1].mxu1 }
 0x23f   : > { %748 = vpow2.f32 %v502_v61  ;;  %v498_v0 = vsel %vm281_vm1, %v497_v60, 0.0 }
 0x240   : > { %499 = vadd.xlane.f32.xlu0 %v498_v0 }
 0x249   : > { %v749_v6 = vpop.eup %748 }
 0x24a   : > { %v505_v7 = vmul.f32 %v749_v6, %v496_v5 }
 0x24c   : > { %v506_v8 = vsel %vm504_vm13, %v505_v7, 0.0 }
 0x24d   : > { %v507_v9 = vsel %vm281_vm1, %v506_v8, 0.0 }
 0x24e   : > { %508 = vadd.xlane.f32.xlu1 %v507_v9 }
 0x2cd   : > { %v500_v10 = vpop.xlane.xlu0 %499 }
 0x2ce   : > { %v501_v11 = vmul.f32 -0.25, %v500_v10 }
 0x2d0   : > { %v513_v12 = vand.u32 2147483647, %v501_v11  ;;  %v512_v42 = vmin.f32 %v501_v11, 0.0 }
 0x2d2   : > { %v514_v15 = vsub.f32 0.0, %v513_v12 }
 0x2d4   : > { %v515_v16 = vmul.f32 1.442695, %v514_v15 }
 0x2db   : > { %v509_v13 = vpop.xlane.xlu1 %508 }
 0x2dc   : > { %750 = vlog2.f32 %v509_v13 }
 0x2dd   : > { %752 = vpow2.f32 %v515_v16 }
 0x2e6   : > { %v751_v17 = vpop.eup %750 }
 0x2e7   : > { %v511_v14 = vmul.f32 0.6931472, %v751_v17  ;;  %v753_v21 = vpop.eup %752 }
 0x2e8   : > { %v517_v22 = vadd.f32 1.0, %v753_v21  ;;  %v520_v25 = vmul.f32 -0.5, %v753_v21  ;;  %v523_v29 = vand.u32 2147483647, %v753_v21 }
 0x2e9   : > { %v528_v18 = vand.u32 2147483647, %v511_v14  ;;  %v527_v43 = vmin.f32 %v511_v14, 0.0 }
 0x2ea   : > { %v521_v28 = vadd.f32 1.0, %v520_v25  ;;  %vm524_vm14 = vcmp.lt.f32.partialorder %v523_v29, 0.0004427343 }
 0x2eb   : > { %v529_v19 = vsub.f32 0.0, %v528_v18 }
 0x2ec   : > { %v522_v36 = vmul.f32 %v753_v21, %v521_v28 }
 0x2ed   : > { %v530_v20 = vmul.f32 1.442695, %v529_v19 }
 0x2ef   : > { %754 = vpow2.f32 %v530_v20 }
 0x2f0   : > { %756 = vlog2.f32 %v517_v22 }
 0x2f9   : > { %v755_v23 = vpop.eup %754 }
 0x2fa   : > { %v532_v24 = vadd.f32 1.0, %v755_v23  ;;  %v535_v26 = vmul.f32 -0.5, %v755_v23  ;;  %v757_v27 = vpop.eup %756  ;;  %v538_v35 = vand.u32 2147483647, %v755_v23 }
 0x2fb   : > { %v519_v32 = vmul.f32 0.6931472, %v757_v27 }
 0x2fc   : > { %758 = vlog2.f32 %v532_v24  ;;  %v536_v33 = vadd.f32 1.0, %v535_v26  ;;  %vm539_vm1 = vcmp.lt.f32.partialorder %v538_v35, 0.0004427343 }
 0x2fd   : > { %v525_v39 = vsel %vm524_vm14, %v522_v36, %v519_v32 }
 0x2fe   : > { %v537_v41 = vmul.f32 %v755_v23, %v536_v33  ;;  %v526_v45 = vsub.f32 %v512_v42, %v525_v39 }
 0x306   : > { %v759_v38 = vpop.eup %758 }
 0x307   : > { %v534_v40 = vmul.f32 0.6931472, %v759_v38 }
 0x309   : > { %v540_v44 = vsel %vm539_vm1, %v537_v41, %v534_v40 }
 0x30a   : > { %v541_v46 = vsub.f32 %v527_v43, %v540_v44 }
 0x30c   : > { %v542_v30 = vadd.f32 %v541_v46, %v526_v45 }
 0x30e   : > { %v549_v47 = vsel %vm548_vm2, %v542_v30, 0.0 }
 0x30f   : > { %550 = vst [vmem:[%s253_s15] sm:$0xff] %v549_v47 }
 0x310 PF: > { %s15_s18 = sadd.s32 1, %s766_s18  }
 0x311   : > { %p12_p5 = scmp.ge.s32.totalorder %s15_s18, 4  }
 0x313   :  { %14 = sbr.rel (!%p12_p5) target bundleno = 1 (0x1), region = 76 }

</bundles_post_ra>
